<compile_context>
chip_gen: v5e
topology: v5e:2x2
jax: 0.10.0
libtpu: 0.0.40
codegen_flags: <defaults>
</compile_context>

<pallas_src>
import functools

import jax
import jax.numpy as jnp
from jax.experimental import pallas as pl
from jax.experimental.pallas import tpu as pltpu

EPS = 1e-7


def _tversky_confusion_kernel(pred_ref, labels_ref, m_out, *,
                              spatial_size, mask_lanes, mask_logits):
    # pred_ref:   (N, C, tS) logits (native dtype), one spatial tile
    # labels_ref: (N, tS)    int8/int32 class labels
    # m_out:      (1, N, C, C) f32 confusion matrix, VMEM-resident accumulator
    #             across the inner (reduction) grid axis
    i = pl.program_id(1)
    n_inner = pl.num_programs(1)

    @pl.when(i == 0)
    def _init():
        m_out[...] = jnp.zeros_like(m_out)

    n, c_dim, ts = pred_ref.shape

    x = pred_ref[...].astype(jnp.float32)          # native-dtype DMA, f32 math
    labels = labels_ref[...].astype(jnp.int32)     # cheap (N, tS) widen

    if mask_lanes:
        # Global tile index from the *unclamped* grid position: lanes past the
        # real spatial extent (partial tail tile, clamped duplicate tiles of
        # the last chunk) must not contribute.
        g = pl.program_id(0) * n_inner + i
        lane = jax.lax.broadcasted_iota(jnp.int32, (n, ts), 1) + g * ts
        valid = lane < spatial_size                # (N, tS)
        labels = jnp.where(valid, labels, -1)      # never matches the iota
        if mask_logits:
            # Partial tail lanes may hold arbitrary bit patterns (NaN/Inf)
            # that would propagate through p*0 into the matmul: sanitize once.
            x = jnp.where(valid[:, None, :], x, 0.0)

    # Numerically-stable softmax over the class axis; EUP approx reciprocal
    # (own VLIW slot) instead of a VALU divide per (N, S) element.
    m = jnp.max(x, axis=1, keepdims=True)
    e = jnp.exp(x - m)
    inv = pl.reciprocal(jnp.sum(e, axis=1, keepdims=True), approx=True)
    p = (e * inv).astype(jnp.bfloat16)             # (N, C, tS)

    # One-hot of the labels from a tiny (1, C, 1) iota; exactly 0 on masked
    # lanes, so they contribute nothing to the confusion matrix.
    cls = jax.lax.broadcasted_iota(jnp.int32, (1, c_dim, 1), 1)
    t = (labels[:, None, :] == cls).astype(jnp.bfloat16)   # (N, C, tS)

    # Per-batch confusion matrix on the (otherwise idle) MXU; the contraction
    # runs along the spatial tile.
    m_out[...] += jnp.einsum("ncs,nks->nck", p, t,
                             preferred_element_type=jnp.float32)[None]


def _device_kind():
    try:
        return jax.devices()[0].device_kind.lower()
    except Exception:
        return ""


def _is_two_core(kind):
    # v7x has 2 TensorCores per chip and 64 MiB VMEM; v5e/v6e have 1 TC, 128 MiB.
    return ("v7" in kind) or ("tpu7" in kind)


def _vmem_need_bytes(n, c, bs, pred_isz, lab_isz):
    pred_tile = n * c * bs * pred_isz
    lab_tile = n * bs * lab_isz
    f32_tile = n * c * bs * 4
    # 2x double-buffered inputs + ~6 live full-tile f32-equivalent temporaries
    # (x, e, p, t, broadcasts) + double-buffered (tiny) output + slack.
    return 2 * (pred_tile + lab_tile) + 6 * f32_tile + 2 * (n * c * c * 4) + (1 << 20)


def _choose_block_s(n, c, s, pred_isz, lab_isz, kind):
    """Largest 128-multiple spatial tile within a generation-aware budget."""
    v7 = _is_two_core(kind)
    tile_budget = (2 << 20) if v7 else (4 << 20)   # native-dtype logits tile
    lane_cap = 8192 if v7 else 16384
    vmem_cap = (40 << 20) if v7 else (96 << 20)

    if n * c * s * pred_isz <= tile_budget and s <= lane_cap:
        bs = s                                      # single full tile
    else:
        max_bs = tile_budget // max(1, n * c * pred_isz)
        bs = max(128, (min(max_bs, s, lane_cap) // 128) * 128)
    while bs > 128 and _vmem_need_bytes(n, c, bs, pred_isz, lab_isz) > vmem_cap:
        bs = max(128, ((bs // 2) // 128) * 128)
    return int(bs)


def _vmem_limit_bytes(n, c, bs, pred_isz, lab_isz, kind):
    cap = (48 << 20) if _is_two_core(kind) else (110 << 20)
    need = _vmem_need_bytes(n, c, bs, pred_isz, lab_isz)
    return int(min(cap, max(32 << 20, need + (4 << 20))))


def tversky_loss(y_pred, y_true, alpha=0.5, beta=0.5,
                 block_s=None, num_chunks=None):
    """Multiclass Tversky loss (from_logits=True, log_loss=False).

    y_pred: (N, C, *spatial) logits; y_true: (N, *spatial) integer labels.
    """
    n, c = int(y_pred.shape[0]), int(y_pred.shape[1])
    s = 1
    for d in y_pred.shape[2:]:
        s *= int(d)

    pred_flat = jnp.reshape(jnp.asarray(y_pred), (n, c, s))     # native dtype
    label_dtype = jnp.int8 if c <= 127 else jnp.int32           # 4x less label traffic
    labels_flat = jnp.reshape(jnp.asarray(y_true), (n, s)).astype(label_dtype)

    kind = _device_kind()
    pred_isz = pred_flat.dtype.itemsize
    lab_isz = labels_flat.dtype.itemsize

    if block_s is None:
        block_s = _choose_block_s(n, c, s, pred_isz, lab_isz, kind)
    block_s = int(min(block_s, s))
    if block_s != s and block_s % 128 != 0:
        block_s = s if s <= 128 else max(128, (block_s // 128) * 128)

    n_tiles = -(-s // block_s)
    if num_chunks is None:
        # The chunk split only pays off on 2-TC chips (v7x); on v5e/v6e it is
        # pure overhead (duplicate tile + extra init/finalize).
        num_chunks = 2 if (_is_two_core(kind) and n_tiles >= 2) else 1
    num_chunks = max(1, min(int(num_chunks), n_tiles))
    tiles_per_chunk = -(-n_tiles // num_chunks)
    last_tile = n_tiles - 1

    has_partial_tail = (s % block_s) != 0
    has_duplicates = (num_chunks * tiles_per_chunk) > n_tiles

    # Tiles past the real range are clamped to the last block (harmless
    # duplicate DMA of real data); the in-kernel label mask zeroes their
    # contribution.
    def pred_index_map(p, i):
        return (0, 0, jnp.minimum(p * tiles_per_chunk + i, last_tile))

    def labels_index_map(p, i):
        return (0, jnp.minimum(p * tiles_per_chunk + i, last_tile))

    kernel = functools.partial(
        _tversky_confusion_kernel,
        spatial_size=s,
        mask_lanes=has_partial_tail or has_duplicates,
        mask_logits=has_partial_tail,
    )

    m_parts = pl.pallas_call(
        kernel,
        out_shape=jax.ShapeDtypeStruct((num_chunks, n, c, c), jnp.float32),
        grid_spec=pltpu.PrefetchScalarGridSpec(
            num_scalar_prefetch=0,
            grid=(num_chunks, tiles_per_chunk),
            in_specs=[
                pl.BlockSpec((n, c, block_s), pred_index_map),
                pl.BlockSpec((n, block_s), labels_index_map),
            ],
            out_specs=pl.BlockSpec((1, n, c, c), lambda p, i: (p, 0, 0, 0)),
        ),
        compiler_params=pltpu.CompilerParams(
            # TODO(synk): on v7x, switch the chunk axis to pltpu.CORE_PARALLEL
            # if profiling shows one idle TensorCore.
            dimension_semantics=("parallel", "arbitrary"),
            vmem_limit_bytes=_vmem_limit_bytes(n, c, block_s, pred_isz,
                                               lab_isz, kind)),
    )(pred_flat, labels_flat)

    # Tiny (C x C) finalize in plain JAX.  M[c, k] = sum_{batch, valid lanes}
    # p_c * onehot_k, so:
    m_total = jnp.sum(m_parts, axis=(0, 1))        # (C, C)
    inter = jnp.diagonal(m_total)                  # sum(p * t)      per class
    sum_p = jnp.sum(m_total, axis=1)               # sum(p)          per class
    cnt = jnp.sum(m_total, axis=0)                 # sum(t)          per class
    fp = sum_p - inter                             # sum(p * (1 - t))
    fn = cnt - inter                               # sum((1 - p) * t)
    denom = jnp.maximum(inter + alpha * fp + beta * fn, EPS)
    scores = inter / denom
    return jnp.mean(1.0 - scores)


def _tversky_loss_ref(y_pred, y_true, alpha=0.5, beta=0.5):
    # Pure-JAX reference mirroring the PyTorch forward (multiclass, from_logits).
    n, c = y_pred.shape[0], y_pred.shape[1]
    p = jax.nn.softmax(jnp.asarray(y_pred, jnp.float32), axis=1).reshape(n, c, -1)
    t = jax.nn.one_hot(jnp.asarray(y_true, jnp.int32).reshape(n, -1), c,
                       dtype=jnp.float32)          # (N, S, C)
    t = jnp.transpose(t, (0, 2, 1))                # (N, C, S)
    dims = (0, 2)
    inter = jnp.sum(p * t, axis=dims)
    fp = jnp.sum(p * (1.0 - t), axis=dims)
    fn = jnp.sum((1.0 - p) * t, axis=dims)
    denom = jnp.maximum(inter + alpha * fp + beta * fn, EPS)
    scores = inter / denom
    return jnp.mean(1.0 - scores)


if __name__ == "__main__":
    key = jax.random.PRNGKey(0)
    k1, k2 = jax.random.split(key)

    # H=W=24 gives S=576: with a forced 128-lane tile this exercises 5 spatial
    # tiles, the partial tail tile (576 = 4*128 + 64) and, with num_chunks=2,
    # the clamped duplicate-tile masking, on any chip generation.
    N, C, H, W = 2, 4, 24, 24
    y_pred = jax.random.normal(k1, (N, C, H, W), dtype=jnp.float32)
    y_true = jax.random.randint(k2, (N, H, W), 0, C, dtype=jnp.int32)

    alpha, beta = 0.5, 0.5   # module hyperparameters, set deterministically

    ref = _tversky_loss_ref(y_pred, y_true, alpha=alpha, beta=beta)
    # bf16 MXU operands + EUP approx reciprocal => ~1e-4-level relative error.
    tol = dict(atol=2e-3, rtol=2e-3)

    l1 = jax.block_until_ready(
        tversky_loss(y_pred, y_true, alpha=alpha, beta=beta,
                     block_s=128, num_chunks=2))
    assert jnp.allclose(l1, ref, **tol), (l1, ref)

    l2 = jax.block_until_ready(
        tversky_loss(y_pred, y_true, alpha=alpha, beta=beta,
                     block_s=128, num_chunks=1))
    assert jnp.allclose(l2, ref, **tol), (l2, ref)

    l3 = jax.block_until_ready(
        tversky_loss(y_pred, y_true, alpha=alpha, beta=beta))   # auto tiling
    assert jnp.allclose(l3, ref, **tol), (l3, ref)

    print("KERNEL_OK")
</pallas_src>

<mosaic_0001>
module attributes {stable_mosaic.version = 11 : i64} {
  func.func @_tversky_confusion_kernel(%arg0: i32, %arg1: i32, %arg2: memref<2x4x128xf32, #tpu.memory_space<vmem>>, %arg3: memref<2x128xi8, #tpu.memory_space<vmem>>, %arg4: memref<1x2x4x4xf32, #tpu.memory_space<vmem>>) attributes {dimension_semantics = [#tpu.dimension_semantics<parallel>, #tpu.dimension_semantics<arbitrary>], iteration_bounds = array<i64: 2, 3>, scalar_prefetch = 0 : i64, scratch_operands = 0 : i64, tpu.core_type = #tpu.core_type<tc>, window_params = [{transform_indices = @transform_0, window_bounds = array<i64: 2, 4, 128>}, {transform_indices = @transform_1, window_bounds = array<i64: 2, 128>}, {transform_indices = @transform_2, window_bounds = array<i64: 1, 2, 4, 4>}]} {
    %c0_i32 = arith.constant 0 : i32
    %0 = arith.cmpi eq, %arg1, %c0_i32 : i32
    %1 = arith.extui %0 : i1 to i32
    %c0_i32_0 = arith.constant 0 : i32
    %2 = arith.cmpi ne, %1, %c0_i32_0 : i32
    scf.if %2 {
      %cst_16 = arith.constant 0.000000e+00 : f32
      %45 = vector.broadcast %cst_16 : f32 to vector<1x2x4x4xf32>
      %c0_17 = arith.constant 0 : index
      %c0_18 = arith.constant 0 : index
      %c0_19 = arith.constant 0 : index
      %c0_20 = arith.constant 0 : index
      %46 = vector.load %arg4[%c0_17, %c0_18, %c0_19, %c0_20] : memref<1x2x4x4xf32, #tpu.memory_space<vmem>>, vector<1x2x4x4xf32>
      tpu.vector_store %arg4[%c0_17, %c0_18, %c0_19, %c0_20], %45 {strides = array<i32>} : memref<1x2x4x4xf32, #tpu.memory_space<vmem>>, vector<1x2x4x4xf32>,
    } else {
    }
    %c0 = arith.constant 0 : index
    %c0_1 = arith.constant 0 : index
    %c0_2 = arith.constant 0 : index
    %3 = vector.load %arg2[%c0, %c0_1, %c0_2] : memref<2x4x128xf32, #tpu.memory_space<vmem>>, vector<2x4x128xf32>
    %c0_3 = arith.constant 0 : index
    %c0_4 = arith.constant 0 : index
    %4 = vector.load %arg3[%c0_3, %c0_4] : memref<2x128xi8, #tpu.memory_space<vmem>>, vector<2x128xi8>
    %5 = arith.extsi %4 : vector<2x128xi8> to vector<2x128xi32>
    %c3_i32 = arith.constant 3 : i32
    %6 = arith.muli %arg0, %c3_i32 : i32
    %7 = arith.addi %6, %arg1 : i32
    %8 = tpu.iota {dimensions = array<i32: 1>} : vector<2x128xi32>
    %c128_i32 = arith.constant 128 : i32
    %9 = arith.muli %7, %c128_i32 : i32
    %10 = vector.broadcast %9 : i32 to vector<2x128xi32>
    %11 = arith.addi %8, %10 : vector<2x128xi32>
    %c576_i32 = arith.constant 576 : i32
    %12 = vector.broadcast %c576_i32 : i32 to vector<2x128xi32>
    %13 = arith.cmpi slt, %11, %12 : vector<2x128xi32>
    %c-1_i32 = arith.constant -1 : i32
    %14 = vector.broadcast %c-1_i32 : i32 to vector<2x128xi32>
    %15 = arith.select %13, %5, %14 : vector<2x128xi1>, vector<2x128xi32>
    %16 = vector.shape_cast %13 : vector<2x128xi1> to vector<2x1x128xi1>
    %cst = arith.constant 0.000000e+00 : f32
    %17 = vector.shape_cast %16 : vector<2x1x128xi1> to vector<2x1x128xi1>
    %18 = vector.broadcast %17 : vector<2x1x128xi1> to vector<2x4x128xi1>
    %19 = vector.broadcast %cst : f32 to vector<2x4x128xf32>
    %20 = arith.select %18, %3, %19 : vector<2x4x128xi1>, vector<2x4x128xf32>
    %cst_5 = arith.constant dense<0xFF800000> : vector<2x128xf32>
    %21 = vector.multi_reduction <maximumf>, %20, %cst_5 [1] : vector<2x4x128xf32> to vector<2x128xf32>
    %22 = vector.shape_cast %21 : vector<2x128xf32> to vector<2x1x128xf32>
    %23 = vector.broadcast %22 : vector<2x1x128xf32> to vector<2x4x128xf32>
    %24 = arith.subf %20, %23 : vector<2x4x128xf32>
    %25 = math.exp %24 : vector<2x4x128xf32>
    %cst_6 = arith.constant dense<0.000000e+00> : vector<2x128xf32>
    %26 = vector.multi_reduction <add>, %25, %cst_6 [1] : vector<2x4x128xf32> to vector<2x128xf32>
    %27 = vector.shape_cast %26 : vector<2x128xf32> to vector<2x1x128xf32>
    %28 = tpu.reciprocal %27 {approx = true} : vector<2x1x128xf32> -> vector<2x1x128xf32>
    %29 = vector.broadcast %28 : vector<2x1x128xf32> to vector<2x4x128xf32>
    %30 = arith.mulf %25, %29 : vector<2x4x128xf32>
    %31 = arith.truncf %30 : vector<2x4x128xf32> to vector<2x4x128xbf16>
    %32 = tpu.iota {dimensions = array<i32: 1>} : vector<1x4x1xi32>
    %33 = vector.shape_cast %15 : vector<2x128xi32> to vector<2x1x128xi32>
    %34 = vector.broadcast %33 : vector<2x1x128xi32> to vector<2x4x128xi32>
    %35 = vector.broadcast %32 : vector<1x4x1xi32> to vector<2x4x128xi32>
    %36 = arith.cmpi eq, %34, %35 : vector<2x4x128xi32>
    %37 = arith.extui %36 : vector<2x4x128xi1> to vector<2x4x128xi32>
    %38 = arith.sitofp %37 : vector<2x4x128xi32> to vector<2x4x128xf32>
    %39 = arith.truncf %38 : vector<2x4x128xf32> to vector<2x4x128xbf16>
    %c0_7 = arith.constant 0 : index
    %c0_8 = arith.constant 0 : index
    %c0_9 = arith.constant 0 : index
    %c0_10 = arith.constant 0 : index
    %40 = vector.load %arg4[%c0_7, %c0_8, %c0_9, %c0_10] : memref<1x2x4x4xf32, #tpu.memory_space<vmem>>, vector<1x2x4x4xf32>
    "tpu.trace_start"() <{level = 10 : i32, message = "ncs,nks->nck"}> : () -> ()
    %cst_11 = arith.constant dense<0.000000e+00> : vector<2x4x4xf32>
    %41 = tpu.matmul %31, %39, %cst_11 {dimension_numbers = #tpu.dot_dimension_numbers<[2], [2], [1], [1], [0, 0, 0, 1, 1, 1], [0], [0]>} : vector<2x4x128xbf16>, vector<2x4x128xbf16>, vector<2x4x4xf32> -> vector<2x4x4xf32>
    "tpu.trace_stop"() : () -> ()
    %42 = vector.shape_cast %41 : vector<2x4x4xf32> to vector<1x2x4x4xf32>
    %43 = arith.addf %40, %42 : vector<1x2x4x4xf32>
    %c0_12 = arith.constant 0 : index
    %c0_13 = arith.constant 0 : index
    %c0_14 = arith.constant 0 : index
    %c0_15 = arith.constant 0 : index
    %44 = vector.load %arg4[%c0_12, %c0_13, %c0_14, %c0_15] : memref<1x2x4x4xf32, #tpu.memory_space<vmem>>, vector<1x2x4x4xf32>
    tpu.vector_store %arg4[%c0_12, %c0_13, %c0_14, %c0_15], %43 {strides = array<i32>} : memref<1x2x4x4xf32, #tpu.memory_space<vmem>>, vector<1x2x4x4xf32>,
    return
  }
  func.func @transform_0(%arg0: i32, %arg1: i32) -> (i32, i32, i32) {
    %c3_i32 = arith.constant 3 : i32
    %0 = arith.muli %arg0, %c3_i32 : i32
    %1 = arith.addi %0, %arg1 : i32
    %c4_i32 = arith.constant 4 : i32
    %2 = arith.minsi %1, %c4_i32 : i32
    %c0_i32 = arith.constant 0 : i32
    %c0_i32_0 = arith.constant 0 : i32
    %c0_i32_1 = arith.constant 0 : i32
    return %c0_i32, %c0_i32_0, %2 : i32, i32, i32
  }
  func.func @transform_1(%arg0: i32, %arg1: i32) -> (i32, i32) {
    %c3_i32 = arith.constant 3 : i32
    %0 = arith.muli %arg0, %c3_i32 : i32
    %1 = arith.addi %0, %arg1 : i32
    %c4_i32 = arith.constant 4 : i32
    %2 = arith.minsi %1, %c4_i32 : i32
    %c0_i32 = arith.constant 0 : i32
    %c0_i32_0 = arith.constant 0 : i32
    return %c0_i32, %2 : i32, i32
  }
  func.func @transform_2(%arg0: i32, %arg1: i32) -> (i32, i32, i32, i32) {
    %c0_i32 = arith.constant 0 : i32
    %c0_i32_0 = arith.constant 0 : i32
    %c0_i32_1 = arith.constant 0 : i32
    %c0_i32_2 = arith.constant 0 : i32
    return %arg0, %c0_i32, %c0_i32_0, %c0_i32_1 : i32, i32, i32, i32
  }
}

</mosaic_0001>

<bundles_post_ra>
// kernel: tpu_custom_call.1
= control target key start
LH: loop header
LB: loop body
LE: loop exit
PB: predicated region body
PF: predicated region fallthrough
CT: control target
= control target key end

     0   :  { %s1053_s0 = inlined_call_operand.hbm [shape: f32[2,4,576], index: 0, kind: input, shape index: {}]   ;;  %s1054_s1 = inlined_call_operand.hbm [shape: s8[2,576], index: 1, kind: input, shape index: {}]   ;;  %s1055_s2 = inlined_call_operand.hbm [shape: f32[2,2,4,4], index: 2, kind: output, shape index: {}]  }
   0x1   :  { %1061 = sst [smem:[#allocation17_spill]] %s1053_s0 }
   0x2   :  { %7 = vsyncpa [#allocation3], 0 }
   0x3   :  { %9 = vsyncpa [#allocation3 + $0x1], 0 }
   0x4   :  { %10 = vsyncpa [#allocation6], 0 }
   0x5   :  { %12 = vsyncpa [#allocation6 + $0x1], 0 }
   0x6   :  { %13 = vsyncpa [#allocation4], 0 }
   0x7   :  { %15 = vsyncpa [#allocation4 + $0x1], 0  ;;  %s836_s9 = smov 0   ;;  %s838_s10 = smov 0  }
   0x8   :  { %s840_s11 = smov 0   ;;  %s842_s12 = smov 0  }
   0x9   :  { %s844_s13 = smov 0   ;;  %s846_s14 = smov 0  }
   0xa   :  { %s848_s15 = smov 0   ;;  %s850_s16 = smov 0  }
   0xb   :  { %s852_s17 = smov 0   ;;  %s854_s18 = smov 0  }
   0xc   :  { %s856_s19 = smov 0  }
   0xd LB: > { %1062 = sst [smem:[#allocation11_spill]] %s791_s14  ;;  %s479_s20 = sadd.s32 4294967295, %s811_s19   ;;  %s811_s19 = sphi %s856_s19, %s21_s19   ;;  %s807_s18 = sphi %s854_s18, %s1079_s18   ;;  %s803_s17 = sphi %s852_s17, %s1078_s17   ;;  %s799_s16 = sphi %s850_s16, %s1077_s16   ;;  %s795_s15 = sphi %s848_s15, %s1076_s15   ;;  %s791_s14 = sphi %s846_s14, %s1075_s14   ;;  %s787_s13 = sphi %s844_s13, %s1084_s13   ;;  %s783_s12 = sphi %s842_s12, %s1083_s12   ;;  %s779_s11 = sphi %s840_s11, %s1082_s11   ;;  %s775_s10 = sphi %s838_s10, %s1081_s10   ;;  %s771_s9 = sphi %s836_s9, %s1080_s9  }
   0xe   : > { %1063 = sst [smem:[#allocation12_spill]] %s803_s17  ;;  %s480_s21 = sadd.s32 4294967294, %s811_s19  }
   0xf   : > { %1064 = sst [smem:[#allocation13_spill]] %s807_s18  ;;  %s30_s22 = sadd.s32 1, %s803_s17 }
  0x10   : > { %s33_s23 = sadd.s32 1, %s807_s18  ;;  %p31_p0 = scmp.ge.s32.totalorder %s30_s22, 3 }
  0x11   : > { %s37_s24 = smul.u32 3, %s807_s18  ;;  %s48_s25 = sadd.s32 1, %s791_s14 }
  0x12   : > { %p55_p1 = scmp.ne.s32.totalorder %s791_s14, %s787_s13  ;;  %s1086_s22 = smov (%p31_p0, %s30_s22), 0 }
  0x13   : > { %1065 = sst [smem:[#allocation14_spill]] %s1086_s22  ;;  %s1088_s23 = smov (!%p31_p0, %s33_s23), %s807_s18 }
  0x14   : > { %s38_s26 = sadd.s32 %s803_s17, %s37_s24  ;;  %p56_p2 = scmp.eq.s32.totalorder %s811_s19, 0 }
  0x15   : > { %p35_p3 = scmp.ge.s32.totalorder %s1088_s23, 2  ;;  %p39_p4 = scmp.lt.s32.totalorder %s38_s26, 4 }
  0x16   : > { %p904_p5 = por %p56_p2, %p55_p1  ;;  %p61_p6 = scmp.ne.s32.totalorder %s787_s13, %s783_s12 }
  0x17   : > { %s1090_s23 = smov (%p35_p3, %s1088_s23), 0  ;;  %s1092_s26 = smov (!%p39_p4, %s38_s26), 4 }
  0x18   : > { %1067 = sst [smem:[#allocation15_spill]] %s1090_s23  ;;  %s41_s28 = smul.u32 3, %s1090_s23 }
  0x19   : > { %p62_p7 = scmp.eq.s32.totalorder %s479_s20, 0  ;;  %s105_s29 = ssub.s32 %s807_s18, %s1090_s23 }
  0x1a   : > { %s108_s30 = sadd.s32 1, %s779_s11  ;;  %s42_s3 = sadd.s32 %s41_s28, %s1086_s22 }
  0x1b   : > { %p919_p8 = por %p62_p7, %p61_p6  ;;  %p43_p9 = scmp.lt.s32.totalorder %s42_s3, 4 }
  0x1c   : > { %p106_p10 = scmp.eq.s32.totalorder %s105_s29, 0  ;;  %p118_p11 = scmp.ne.s32.totalorder %s779_s11, %s775_s10 }
  0x1d   : > { %p119_p12 = scmp.eq.s32.totalorder %s479_s20, 5  ;;  %s1094_s3 = smov (!%p43_p9, %s42_s3), 4 }
  0x1e   : > { %s926_s5 = scalar_select %p106_p10, %s779_s11, %s108_s30  }
  0x1f   : > { %s45_s6 = ssub.s32 %s1092_s26, %s1094_s3  ;;  %p929_p13 = por %p119_p12, %p118_p11 }
  0x20   : > { %p46_p0 = scmp.eq.s32.totalorder %s45_s6, 0  ;;  %p124_p1 = scmp.ne.s32.totalorder %s775_s10, %s771_s9 }
  0x21   : > { %p125_p2 = scmp.eq.s32.totalorder %s480_s21, 5  ;;  %p519_p4 = scmp.lt.s32.totalorder %s811_s19, 6 }
  0x22   : > { %s940_s8 = scalar_select %p46_p0, %s791_s14, %s48_s25  }
  0x23   : > { %p942_p3 = por %p125_p2, %p124_p1  ;;  %s145_s20 = sand.u32 1, %s791_s14  }
  0x24   : > { %1070 = sst [smem:[#allocation16_spill]] %s940_s8  ;;  %s484_s24 = sshll.u32 %s1092_s26, 2 }
  0x25   : > { %s483_s28 = sshll.u32 %s145_s20, 3  ;;  %s1072_s0 = sld [smem:[#allocation17_spill]] }
  0x26   : > { %s149_s23 = scalar_lea.vmem [#allocation2], %s483_s28  ;;  %p954_p6 = pnand %p519_p4, %p904_p5 }
  0x27   : > { %s160_s21 = sshll.u32 %s149_s23, 4  ;;  %p485_p7 = scmp.ge.s32.totalorder %s811_s19, 1  ;;  %s161_s21 = int_to_ptr.vmem [resolvable:$true] %s160_s21 }
  0x28   : > { %s146_s22 = scalar_lea.sflag [#allocation3], %s145_s20  ;;  %s813_s18 = smov 320  }
  0x29   : > { %s814_s17 = smov 64   ;;  %s815_s8 = smov 4  }
  0x2a   : > { %p189_p9 = scmp.lt.s32.totalorder %s811_s19, 7  ;;  %s180_s23 = scalar_lea.hbm %s1054_s1, %s1092_s26 }
  0x2b   : > { %s157_s3 = scalar_lea.hbm %s1072_s0, %s484_s24  ;;  %s182_s27 = sshll.u32 %s180_s23, 4  ;;  %s183_s27 = int_to_ptr.hbm [resolvable:$true] %s182_s27 }
  0x2c   : > { %s158_s6 = sshll.u32 %s157_s3, 4  ;;  %p190_p10 = pnand %p485_p7, %p189_p9  ;;  %s159_s6 = int_to_ptr.hbm [resolvable:$true] %s158_s6 }
  0x2d   : > { %511 = dma.hbm_to_vmem [thread:$0]  (!%p954_p6), %s159_s6, 128, %s161_s21, %s146_s22, %s813_s18, %s814_s17, %s815_s8  }
  0x2e   : > { %s173_s29 = scalar_lea.vmem [#allocation5], %s145_s20  ;;  %s171_s3 = scalar_lea.sflag [#allocation6], %s145_s20 }
  0x2f   : > { %s184_s30 = sshll.u32 %s173_s29, 4  ;;  %193 = sbr.rel (%p190_p10) target bundleno = 264 (0x108), region = 28  ;;  %s185_s30 = int_to_ptr.vmem [resolvable:$true] %s184_s30 }
  0x30   : > { %514 = dma.hbm_to_vmem [thread:$0]  (!%p954_p6), %s183_s27, 16, %s185_s30, %s171_s3  }
  0x31   : > { %s195_s0 = sand.u32 (!%p190_p10), 1, %s787_s13  }
  0x32   : > { %s486_s14 = sshll.u32 (!%p190_p10), %s195_s0, 3  ;;  %s196_s17 = scalar_lea.sflag (!%p190_p10), [#allocation3], %s195_s0 }
  0x33   : > { %s969_s18 = scalar_lea.vmem (!%p190_p10), [#allocation2], %s486_s14 }
  0x34   : > { %758 = dma.done.wait (%p919_p8), %s196_s17, 128  }
  0x35   : > { %760 = vsyncadd (%p919_p8), %s196_s17, 4294967168  ;;  %s206_s22 = scalar_lea.sflag [#allocation6], %s195_s0  ;;  %s208_s26 = scalar_lea.vmem [#allocation5], %s195_s0 }
  0x36   : > { %762 = dma.done.wait (%p919_p8), %s206_s22, 16  }
  0x37   : > { %764 = vsyncadd (%p919_p8), %s206_s22, 4294967280  ;;  %s231_s8 = sand.u32 1, %s775_s10   ;;  %p488_p5 = scmp.ne.s32.totalorder %s795_s15, 0 }
  0x38   : > { %s487_s20 = sshll.u32 %s231_s8, 3 }
  0x39   : > { %s982_s14 = scalar_lea.vmem [#allocation7], %s487_s20  ;;  %246 = sbr.rel (%p488_p5) target bundleno = 65 (0x41), region = 40 }
  0x3e   : > { %vm247_vm0 = vcmask 27648   ;;  %v816_v0 = vmov 0.0  }
  0x3f   : > { %248 = vst.msk [vmem:[%s982_s14] sm:$0xf] %vm247_vm0, %v816_v0 }
  0x40   : > { %249 = vst.msk [vmem:[%s982_s14 + $0x4] sm:$0xf] %vm247_vm0, %v816_v0 }
  0x41 PF: > { %v256_v1 = vlaneseq  ;;  %s254_s0 = smul.u32 3, %s799_s16  ;;  %v252_v2 = vld [vmem:[%s208_s26] sm:$0x1]  ;;  %v817_v9 = vmov 0   ;;  %vm273_vm2 = vcmask 1043456   ;;  %vm357_vm10 = vcmask 27648  }
  0x42   : > { %v253_v4 = vunpack.c.0.s8 %v252_v2  ;;  %v250_v11 = vld [vmem:[%s969_s18] sm:$0xf]  ;;  %v251_v19 = vld [vmem:[%s969_s18 + $0x4] sm:$0xf]  ;;  %v818_v22 = vmov 1.0|1.0  }
  0x43   : > { %v257_v3 = vand.u32 127, %v256_v1  ;;  %s255_s4 = sadd.s32 %s795_s15, %s254_s0  ;;  %v315_v7 = vshrl.u32 %v256_v1, 7  ;;  %s501_s15 = sshll.u32 %s799_s16, 3 }
  0x44   : > { %s489_s6 = sshll.u32 %s255_s4, 7  ;;  %s372_s24 = scalar_lea.hbm %s1055_s2, %s501_s15 }
  0x45   : > { %v259_v5 = vstv %s489_s6  ;;  %s373_s28 = sshll.u32 %s982_s14, 4  ;;  %s375_s23 = sshll.u32 %s372_s24, 4  ;;  %s374_s28 = int_to_ptr.vmem [resolvable:$true] %s373_s28  ;;  %s376_s23 = int_to_ptr.hbm [resolvable:$true] %s375_s23 }
  0x46   : > { %v260_v6 = vadd.s32 %v259_v5, %v257_v3  ;;  %v327_v63 = vld [vmem:[%s982_s14] sm:$0xf]  ;;  %s361_s16 = scalar_lea.sflag [#allocation4], %s231_s8  ;;  %s699_s27 = sshra.s32 %s376_s23, 4  ;;  %s700_s27 = int_to_ptr.hbm [resolvable:$true] %s699_s27 }
  0x47   : > { %v328_v2 = vld [vmem:[%s982_s14 + $0x4] sm:$0xf]  ;;  %s701_s29 = scalar_lea.hbm %s700_s27, 8  ;;  %s705_s17 = scalar_lea.hbm %s1055_s2, 16 }
  0x48   : > { %vm261_vm1 = vcmp.lt.s32.totalorder %v260_v6, 576  ;;  %p702_p8 = scmp.ne.s32.totalorder %s700_s27, %s701_s29  ;;  %p706_p0 = scmp.lt.s32.totalorder %s700_s27, %s1055_s2 }
  0x49   : > { %v262_v8 = vsel %vm261_vm1, %v253_v4, 4294967295  ;;  %v263_v10 = vsel %vm261_vm1, 1, %v817_v9  ;;  %p707_p1 = scmp.lt.s32.totalorder %s705_s17, %s701_s29 }
  0x4a   : > { %v264_v12 = vrot.slane %v263_v10, 1  ;;  %v267_v13 = vperm.slane %v263_v10, 0  ;;  %v317_v14 = vperm.slane %v262_v8, 0  ;;  %v316_v15 = vrot.slane %v262_v8, 1  ;;  %p703_p11 = pnand %p702_p8, %p929_p13 }
  0x4b   : > { %p708_p2 = por %p707_p1, %p706_p0 }
  0x4c   : > { %vm265_vm3 = vcmp.ne.s32.totalorder %v264_v12, 0  ;;  %vm269_vm4 = vcmp.eq.s32.totalorder %v267_v13, 1  ;;  %vm319_vm5 = vcmp.eq.s32.totalorder %v317_v14, %v315_v7  ;;  %v318_v16 = vperm.slane %v316_v15, 0  ;;  %p704_p12 = pneg %p703_p11 }
  0x4d   : > { %v266_v17 = vsel %vm265_vm3, 1, %v817_v9  ;;  %v271_v18 = vsel %vm269_vm4, %v250_v11, 0.0  ;;  %vm492_vm6 = vmpackc.low %vm319_vm5, %vm319_vm5 }
  0x4e   : > { %v268_v20 = vperm.slane %v266_v17, 0  ;;  %v274_v21 = vsel %vm273_vm2, %v271_v18, -inf  ;;  %493 = vmatpush.bf16.xpose.msk.msra.mxu0 %vm492_vm6, %v818_v22  ;;  %vm320_vm7 = vcmp.eq.s32.totalorder %v318_v16, %v315_v7  ;;  %p709_p4 = pnand %p708_p2, %p704_p12 }
  0x4f   : > { %v275_v23 = vrot.slane %v274_v21, 4  ;;  %vm494_vm8 = vmpackc.low %vm320_vm7, %vm320_vm7 }
  0x50   : > { %vm270_vm9 = vcmp.eq.s32.totalorder %v268_v20, 1  ;;  %495 = vmatpush.bf16.xpose.msk.msra.mxu1 %vm494_vm8, %v818_v22 }
  0x51   : > { %v272_v24 = vsel %vm270_vm9, %v251_v19, 0.0  ;;  %v276_v25 = vmax.f32 %v274_v21, %v275_v23 }
  0x52   : > { %v281_v26 = vsel %vm273_vm2, %v272_v24, -inf }
  0x53   : > { %v277_v27 = vrot.slane %v276_v25, 2  ;;  %v282_v28 = vrot.slane %v281_v26, 4 }
  0x55   : > { %v278_v29 = vmax.f32 %v276_v25, %v277_v27  ;;  %v283_v30 = vmax.f32 %v281_v26, %v282_v28 }
  0x57   : > { %v279_v31 = vrot.slane %v278_v29, 1  ;;  %v284_v32 = vrot.slane %v283_v30, 2 }
  0x59   : > { %v280_v33 = vmax.f32 %v278_v29, %v279_v31  ;;  %v285_v34 = vmax.f32 %v283_v30, %v284_v32 }
  0x5b   : > { %v288_v35 = vsub.f32 %v271_v18, %v280_v33  ;;  %v286_v36 = vrot.slane %v285_v34, 1 }
  0x5d   : > { %v290_v37 = vmul.f32 1.442695, %v288_v35  ;;  %v287_v38 = vmax.f32 %v285_v34, %v286_v36 }
  0x5f   : > { %617 = vpow2.f32 %v290_v37  ;;  %v289_v39 = vsub.f32 %v272_v24, %v287_v38 }
  0x61   : > { %v292_v40 = vmul.f32 1.442695, %v289_v39 }
  0x63   : > { %619 = vpow2.f32 %v292_v40 }
  0x65   : > { %v618_v41 = vpop.eup %617 }
  0x66   : > { %v294_v42 = vsel %vm273_vm2, %v618_v41, 0.0 }
  0x67   : > { %v295_v43 = vrot.slane %v294_v42, 4 }
  0x69   : > { %v620_v44 = vpop.eup %619  ;;  %v296_v45 = vadd.f32 %v295_v43, %v294_v42 }
  0x6a   : > { %v301_v46 = vsel %vm273_vm2, %v620_v44, 0.0 }
  0x6b   : > { %v297_v47 = vrot.slane %v296_v45, 2  ;;  %v302_v48 = vrot.slane %v301_v46, 4 }
  0x6d   : > { %v298_v49 = vadd.f32 %v297_v47, %v296_v45  ;;  %v303_v50 = vadd.f32 %v302_v48, %v301_v46 }
  0x6f   : > { %v299_v51 = vrot.slane %v298_v49, 1  ;;  %v304_v52 = vrot.slane %v303_v50, 2 }
  0x71   : > { %v300_v53 = vadd.f32 %v299_v51, %v298_v49  ;;  %v305_v54 = vadd.f32 %v304_v52, %v303_v50 }
  0x73   : > { %621 = vrcp.f32 %v300_v53  ;;  %v306_v55 = vrot.slane %v305_v54, 1 }
  0x75   : > { %v307_v56 = vadd.f32 %v306_v55, %v305_v54 }
  0x77   : > { %623 = vrcp.f32 %v307_v56 }
  0x79   : > { %v622_v57 = vpop.eup %621 }
  0x7a   : > { %v310_v58 = vmul.f32 %v622_v57, %v618_v41 }
  0x7c   : > { %v312_v59 = vpack.c.bf16 %v310_v58, %v310_v58 }
  0x7d   : > { %v624_v60 = vpop.eup %623 }
  0x7e   : > { %337 = vmatmul.bf16.vlgmr.msra.gmra.mxu0 %v312_v59  ;;  %v311_v61 = vmul.f32 %v624_v60, %v620_v44 }
  0x80   : > { %v313_v62 = vpack.c.bf16 %v311_v61, %v311_v61 }
  0x82   : > { %350 = vmatmul.bf16.vlgmr.msra.gmra.mxu1 %v313_v62 }
  0xfb   : > { %v338_v0 = vpop.f32.mrf.mxu0 }
  0xfc   : > { %v355_v1 = vadd.f32 %v338_v0, %v327_v63 }
  0xfe   : > { %358 = vst.msk [vmem:[%s982_s14] sm:$0xf] %vm357_vm10, %v355_v1 }
  0xff   : > { %v351_v3 = vpop.f32.mrf.mxu1 }
 0x100   : > { %v356_v4 = vadd.f32 %v351_v3, %v328_v2 }
 0x102   : > { %359 = vst.msk [vmem:[%s982_s14 + $0x4] sm:$0xf] %vm357_vm10, %v356_v4 }
 0x103   : > { %v340_v5 = vpop.f32.mrf.mxu0 }
 0x104   : > { %712 = shalt.err (!%p709_p4)
}
 0x105   : > { %s819_s26 = smov 64   ;;  %s820_s8 = smov 4  }
 0x106   : > { %506 = dma.vmem_to_hbm [thread:$0]  (%p929_p13), %s374_s28, 128, %s376_s23, %s361_s16, %s819_s26, %s819_s26, %s820_s8  }
 0x107   : > { %v353_v6 = vpop.f32.mrf.mxu1 }
 0x108 PF: > { %p520_p6 = scmp.ge.s32.totalorder %s811_s19, 2  ;;  %s390_s20 = sand.u32 1, %s771_s9  }
 0x109   : > { %s391_s14 = scalar_lea.sflag [#allocation4], %s390_s20 }
 0x10a   : > { %p516_p7 = pnand %p520_p6, %p942_p3 }
 0x10c   : > { %p517_p9 = pneg %p516_p7 }
 0x10e   : > { %766 = dma.done.wait (%p517_p9), %s391_s14, 128  }
 0x10f   : > { %768 = vsyncadd (%p517_p9), %s391_s14, 4294967168  ;;  %s21_s19 = sadd.s32 1, %s811_s19   ;;  %s1074_s7 = sld [smem:[#allocation11_spill]] }
 0x110   : > { %p18_p10 = scmp.ge.s32.totalorder %s21_s19, 8   ;;  %s1075_s14 = sld [smem:[#allocation16_spill]] }
 0x111   : > { %s1076_s15 = sld [smem:[#allocation12_spill]]  ;;  %s1080_s9 = smov %s775_s10 }
 0x112   : > { %s1077_s16 = sld [smem:[#allocation13_spill]]  ;;  %s1081_s10 = smov %s779_s11 }
 0x113   : > { %s1078_s17 = sld [smem:[#allocation14_spill]]  ;;  %s1082_s11 = smov %s926_s5 }
 0x114   : > { %s1079_s18 = sld [smem:[#allocation15_spill]]  ;;  %s1083_s12 = smov %s787_s13 }
 0x115   : > { %s1084_s13 = smov %s1074_s7  ;;  %20 = sbr.rel (!%p18_p10) target bundleno = 13 (0xd), region = 90 }
 0x11a   :  { %397 = vsyncpa [#allocation3], 1 }
 0x11b   :  { %399 = vsyncpa [#allocation3 + $0x1], 1 }
 0x11c   :  { %400 = vsyncpa [#allocation6], 1 }
 0x11d   :  { %402 = vsyncpa [#allocation6 + $0x1], 1 }
 0x11e   :  { %403 = vsyncpa [#allocation4], 1 }
 0x11f   :  { %405 = vsyncpa [#allocation4 + $0x1], 1 }

</bundles_post_ra>
